<compile_context>
chip_gen: v5e
topology: v5e:2x2
jax: 0.10.0
libtpu: 0.0.40
codegen_flags: <defaults>
</compile_context>

<pallas_src>
import jax
import jax.numpy as jnp
from jax.experimental import pallas as pl
from jax.experimental.pallas import tpu as pltpu

OBS_DIM = 3      # len(env.observation_space) for Blackjack-v1
H1 = 120
H2 = 84
N_ACTIONS = 2    # env.action_space.n for Blackjack-v1
H_PAD = 128      # both hidden dims padded to one MXU/vreg lane width
OBS_PAD = 8      # 3 features + 1 bias-ones row + 4 zero rows (sublane aligned)


def _mlp_kernel(x_ref, w1_ref, w2_ref, b2_ref, w3_ref, b3_ref, o_ref):
    """One batch tile: out = W3 @ relu(W2 @ relu(W1p @ xp) + b2) + b3.

    xp is features-major (OBS_PAD, TB); its row OBS_DIM is all ones, so the
    layer-1 bias lives in column OBS_DIM of W1p (no separate bias add).
    MXU accumulates in f32; activations are re-cast to the compute dtype
    (bf16 halves the (128, TB) intermediate footprint on v6e/v7x).
    """
    x = x_ref[...]                    # (OBS_PAD, TB), compute dtype (f32/bf16)
    cdt = x.dtype

    # Layer 1 (bias folded into W1p via the ones row of x).
    h1 = jnp.dot(w1_ref[...], x, preferred_element_type=jnp.float32)     # (H_PAD, TB)
    h1 = jnp.maximum(h1, 0.0).astype(cdt)

    # Layer 2 — bias + ReLU on the f32 accumulator, carry result in compute dtype.
    h2 = jnp.dot(w2_ref[...], h1, preferred_element_type=jnp.float32)    # (H_PAD, TB)
    h2 = jnp.maximum(h2 + b2_ref[...], 0.0).astype(cdt)

    # Layer 3 — lane-dense (N_ACTIONS, TB) output, stored as f32.
    out = jnp.dot(w3_ref[...], h2, preferred_element_type=jnp.float32)   # (N_ACTIONS, TB)
    o_ref[...] = (out + b3_ref[...]).astype(o_ref.dtype)


def init_params(key):
    """Torch-style params: weights (out, in), biases (out,), fan-in uniform init."""
    ks = jax.random.split(key, 6)

    def linear(kw, kb, fan_in, fan_out):
        bound = 1.0 / jnp.sqrt(float(fan_in))
        w = jax.random.uniform(kw, (fan_out, fan_in), jnp.float32, -bound, bound)
        b = jax.random.uniform(kb, (fan_out,), jnp.float32, -bound, bound)
        return w, b

    w1, b1 = linear(ks[0], ks[1], OBS_DIM, H1)
    w2, b2 = linear(ks[2], ks[3], H1, H2)
    w3, b3 = linear(ks[4], ks[5], H2, N_ACTIONS)
    return (w1, b1, w2, b2, w3, b3)


def prepare_params(params, compute_dtype=jnp.float32):
    """One-time preprocessing: pad to MXU-friendly shapes and fold b1 into W1.

    Weights are cast to `compute_dtype` (bf16 halves weight+input DMA bytes on
    every generation — v5e's MXU takes bf16 natively too); b2/b3 stay f32 so the
    bias adds run on the f32 accumulator. Padding rows/cols are exact no-ops
    through ReLU and the next matmul.
    """
    w1, b1, w2, b2, w3, b3 = params

    # Layer 1: (120, 3) -> (128, 8); column OBS_DIM holds b1 (multiplies the
    # all-ones row appended to x), remaining padding is zero.
    w1p = jnp.zeros((H_PAD, OBS_PAD), jnp.float32)
    w1p = w1p.at[:H1, :OBS_DIM].set(w1).at[:H1, OBS_DIM].set(b1)

    w2p = jnp.pad(w2, ((0, H_PAD - H2), (0, H_PAD - H1)))         # (128, 128)
    w3p = jnp.pad(w3, ((0, 0), (0, H_PAD - H2)))                  # (2, 128)

    b2p = jnp.pad(b2, (0, H_PAD - H2)).reshape(H_PAD, 1).astype(jnp.float32)
    b3p = b3.reshape(N_ACTIONS, 1).astype(jnp.float32)

    return (w1p.astype(compute_dtype),
            w2p.astype(compute_dtype), b2p,
            w3p.astype(compute_dtype), b3p)


def value_network_forward(x, prepared_params, *, block_b=4096, vmem_limit_bytes=None):
    """x: (B, OBS_DIM) float32 -> (B, N_ACTIONS) float32.

    block_b: batch tile (lane axis), multiple of 128. 2048-8192 amortizes the
    per-grid-step overhead; per-tile footprint is ~0.5-1 KiB * TB (bf16/f32
    activations), so 4096 fits comfortably under every generation's default
    scoped VMEM (v5e 16 MiB, v6e/v7x 32 MiB). For f32 activations at >=16384
    on v5e/v7x pass vmem_limit_bytes explicitly.
    """
    assert block_b % 128 == 0, "batch tile must be a multiple of 128 lanes"
    w1, w2, b2, w3, b3 = prepared_params
    cdt = w1.dtype
    B = x.shape[0]
    assert x.shape[1] == OBS_DIM

    # Tile sizing: never wider than the 128-rounded batch; keep >=2 grid steps
    # when possible so ("parallel",) can shard the batch across v7x's 2 TCs.
    b128 = pl.cdiv(B, 128) * 128
    tb = min(block_b, b128)
    if b128 >= 256:
        tb = min(tb, pl.cdiv(pl.cdiv(b128, 2), 128) * 128)
    b_pad = pl.cdiv(B, tb) * tb
    grid = (b_pad // tb,)

    # Features-major, lane-dense input slab with the bias-ones row appended.
    # Single small fused pre-pass over x (B * 12 bytes).
    # TODO(synk): if the caller keeps observations features-major (OBS_PAD, B)
    # upstream, this cast+transpose+pad prep disappears entirely.
    xt = jnp.concatenate([x.astype(cdt), jnp.ones((B, 1), cdt)], axis=1).T   # (4, B)
    xt = jnp.pad(xt, ((0, OBS_PAD - OBS_DIM - 1), (0, b_pad - B)))           # (8, b_pad)

    def resident(arr):
        # Full-array block, constant index -> fetched once, stays in VMEM.
        # Single-buffered: constants need no pipelining (saves ~70-135 KiB VMEM).
        return pl.BlockSpec(arr.shape, lambda i: (0, 0),
                            pipeline_mode=pl.Buffered(1))

    in_specs = [
        pl.BlockSpec((OBS_PAD, tb), lambda i: (0, i)),    # pipelined x tile
        resident(w1), resident(w2), resident(b2), resident(w3), resident(b3),
    ]
    out_specs = pl.BlockSpec((N_ACTIONS, tb), lambda i: (0, i))

    itemsize = jnp.dtype(cdt).itemsize
    weight_bytes = sum(int(a.size) * a.dtype.itemsize for a in prepared_params)
    cost = pl.CostEstimate(
        flops=2 * b_pad * (OBS_PAD * H_PAD + H_PAD * H_PAD + H_PAD * N_ACTIONS),
        transcendentals=0,
        bytes_accessed=b_pad * OBS_PAD * itemsize + b_pad * N_ACTIONS * 4 + weight_bytes,
    )

    out_t = pl.pallas_call(
        _mlp_kernel,
        out_shape=jax.ShapeDtypeStruct((N_ACTIONS, b_pad), jnp.float32),
        grid=grid,
        in_specs=in_specs,
        out_specs=out_specs,
        compiler_params=pltpu.CompilerParams(
            dimension_semantics=("parallel",),            # shard batch across TCs
            vmem_limit_bytes=vmem_limit_bytes,
        ),
        cost_estimate=cost,
    )(xt, w1, w2, b2, w3, b3)

    # Drop batch padding, return PyTorch-style (B, N_ACTIONS).
    return out_t[:, :B].T


def _reference_forward(x, params):
    w1, b1, w2, b2, w3, b3 = params
    h1 = jnp.maximum(x @ w1.T + b1, 0.0)
    h2 = jnp.maximum(h1 @ w2.T + b2, 0.0)
    return h2 @ w3.T + b3


if __name__ == "__main__":
    key = jax.random.PRNGKey(0)
    k_params, k_x = jax.random.split(key)

    params = init_params(k_params)

    # Small batch of synthetic Blackjack observations: (player_sum, dealer_card, usable_ace).
    batch = 8
    x = jax.random.uniform(k_x, (batch, OBS_DIM), jnp.float32, 0.0, 21.0)

    # f32 path (strict correctness check).
    prepared = prepare_params(params, compute_dtype=jnp.float32)
    out = jax.block_until_ready(value_network_forward(x, prepared))
    ref = _reference_forward(x, params)
    assert out.shape == (batch, N_ACTIONS)
    assert jnp.allclose(out, ref, rtol=2e-4, atol=1e-3), "f32 mismatch vs reference"

    # Non-multiple-of-tile batch with a multi-step grid (exercises tiling + padding
    # + the >=2-step megacore split).
    batch2 = 300
    x2 = jax.random.uniform(jax.random.PRNGKey(1), (batch2, OBS_DIM), jnp.float32, 0.0, 21.0)
    out2 = jax.block_until_ready(value_network_forward(x2, prepared, block_b=256))
    ref2 = _reference_forward(x2, params)
    assert out2.shape == (batch2, N_ACTIONS)
    assert jnp.allclose(out2, ref2, rtol=2e-4, atol=1e-3), "tiled f32 mismatch vs reference"

    # bf16 storage/compute for x, weights and carried activations (HBM + VMEM win
    # on all generations); f32 MXU accumulation, f32 bias adds, f32 output.
    prepared_bf16 = prepare_params(params, compute_dtype=jnp.bfloat16)
    out_bf16 = jax.block_until_ready(value_network_forward(x, prepared_bf16))
    assert out_bf16.shape == (batch, N_ACTIONS)
    err = float(jnp.max(jnp.abs(out_bf16 - ref)))
    scale = float(jnp.max(jnp.abs(ref))) + 1.0
    assert err < 0.05 * scale, f"bf16 path too far from reference: {err} (scale {scale})"

    print("KERNEL_OK")
</pallas_src>

<mosaic_0001>
module attributes {stable_mosaic.version = 11 : i64} {
  func.func @_mlp_kernel(%arg0: i32, %arg1: memref<8x128xf32, #tpu.memory_space<vmem>>, %arg2: memref<128x8xf32, #tpu.memory_space<vmem>>, %arg3: memref<128x128xf32, #tpu.memory_space<vmem>>, %arg4: memref<128x1xf32, #tpu.memory_space<vmem>>, %arg5: memref<2x128xf32, #tpu.memory_space<vmem>>, %arg6: memref<2x1xf32, #tpu.memory_space<vmem>>, %arg7: memref<2x128xf32, #tpu.memory_space<vmem>>) attributes {dimension_semantics = [#tpu.dimension_semantics<parallel>], iteration_bounds = array<i64: 1>, scalar_prefetch = 0 : i64, scratch_operands = 0 : i64, tpu.core_type = #tpu.core_type<tc>, window_params = [{transform_indices = @transform_0, window_bounds = array<i64: 8, 128>}, {pipeline_mode = #tpu.pipeline_mode<synchronous>, transform_indices = @transform_1, window_bounds = array<i64: 128, 8>}, {pipeline_mode = #tpu.pipeline_mode<synchronous>, transform_indices = @transform_2, window_bounds = array<i64: 128, 128>}, {pipeline_mode = #tpu.pipeline_mode<synchronous>, transform_indices = @transform_3, window_bounds = array<i64: 128, 1>}, {pipeline_mode = #tpu.pipeline_mode<synchronous>, transform_indices = @transform_4, window_bounds = array<i64: 2, 128>}, {pipeline_mode = #tpu.pipeline_mode<synchronous>, transform_indices = @transform_5, window_bounds = array<i64: 2, 1>}, {transform_indices = @transform_6, window_bounds = array<i64: 2, 128>}]} {
    %c0 = arith.constant 0 : index
    %c0_0 = arith.constant 0 : index
    %0 = vector.load %arg1[%c0, %c0_0] : memref<8x128xf32, #tpu.memory_space<vmem>>, vector<8x128xf32>
    %c0_1 = arith.constant 0 : index
    %c0_2 = arith.constant 0 : index
    %1 = vector.load %arg2[%c0_1, %c0_2] : memref<128x8xf32, #tpu.memory_space<vmem>>, vector<128x8xf32>
    %cst = arith.constant dense<0.000000e+00> : vector<128x128xf32>
    %2 = tpu.matmul %1, %0, %cst {dimension_numbers = #tpu.dot_dimension_numbers<[1], [0], [0], [1], [0, 0, 1, 1], [], []>} : vector<128x8xf32>, vector<8x128xf32>, vector<128x128xf32> -> vector<128x128xf32>
    %cst_3 = arith.constant 0.000000e+00 : f32
    %3 = vector.broadcast %cst_3 : f32 to vector<128x128xf32>
    %4 = arith.maximumf %2, %3 : vector<128x128xf32>
    %c0_4 = arith.constant 0 : index
    %c0_5 = arith.constant 0 : index
    %5 = vector.load %arg3[%c0_4, %c0_5] : memref<128x128xf32, #tpu.memory_space<vmem>>, vector<128x128xf32>
    %cst_6 = arith.constant dense<0.000000e+00> : vector<128x128xf32>
    %6 = tpu.matmul %5, %4, %cst_6 {dimension_numbers = #tpu.dot_dimension_numbers<[1], [0], [0], [1], [0, 0, 1, 1], [], []>} : vector<128x128xf32>, vector<128x128xf32>, vector<128x128xf32> -> vector<128x128xf32>
    %c0_7 = arith.constant 0 : index
    %c0_8 = arith.constant 0 : index
    %7 = vector.load %arg4[%c0_7, %c0_8] : memref<128x1xf32, #tpu.memory_space<vmem>>, vector<128x1xf32>
    %8 = vector.broadcast %7 : vector<128x1xf32> to vector<128x128xf32>
    %9 = arith.addf %6, %8 : vector<128x128xf32>
    %cst_9 = arith.constant 0.000000e+00 : f32
    %10 = vector.broadcast %cst_9 : f32 to vector<128x128xf32>
    %11 = arith.maximumf %9, %10 : vector<128x128xf32>
    %c0_10 = arith.constant 0 : index
    %c0_11 = arith.constant 0 : index
    %12 = vector.load %arg5[%c0_10, %c0_11] : memref<2x128xf32, #tpu.memory_space<vmem>>, vector<2x128xf32>
    %cst_12 = arith.constant dense<0.000000e+00> : vector<2x128xf32>
    %13 = tpu.matmul %12, %11, %cst_12 {dimension_numbers = #tpu.dot_dimension_numbers<[1], [0], [0], [1], [0, 0, 1, 1], [], []>} : vector<2x128xf32>, vector<128x128xf32>, vector<2x128xf32> -> vector<2x128xf32>
    %c0_13 = arith.constant 0 : index
    %c0_14 = arith.constant 0 : index
    %14 = vector.load %arg6[%c0_13, %c0_14] : memref<2x1xf32, #tpu.memory_space<vmem>>, vector<2x1xf32>
    %15 = vector.broadcast %14 : vector<2x1xf32> to vector<2x128xf32>
    %16 = arith.addf %13, %15 : vector<2x128xf32>
    %c0_15 = arith.constant 0 : index
    %c0_16 = arith.constant 0 : index
    %17 = vector.load %arg7[%c0_15, %c0_16] : memref<2x128xf32, #tpu.memory_space<vmem>>, vector<2x128xf32>
    tpu.vector_store %arg7[%c0_15, %c0_16], %16 {strides = array<i32>} : memref<2x128xf32, #tpu.memory_space<vmem>>, vector<2x128xf32>,
    return
  }
  func.func @transform_0(%arg0: i32) -> (i32, i32) {
    %c0_i32 = arith.constant 0 : i32
    %c0_i32_0 = arith.constant 0 : i32
    return %c0_i32, %arg0 : i32, i32
  }
  func.func @transform_1(%arg0: i32) -> (i32, i32) {
    %c0_i32 = arith.constant 0 : i32
    %c0_i32_0 = arith.constant 0 : i32
    %c0_i32_1 = arith.constant 0 : i32
    return %c0_i32, %c0_i32_0 : i32, i32
  }
  func.func @transform_2(%arg0: i32) -> (i32, i32) {
    %c0_i32 = arith.constant 0 : i32
    %c0_i32_0 = arith.constant 0 : i32
    %c0_i32_1 = arith.constant 0 : i32
    return %c0_i32, %c0_i32_0 : i32, i32
  }
  func.func @transform_3(%arg0: i32) -> (i32, i32) {
    %c0_i32 = arith.constant 0 : i32
    %c0_i32_0 = arith.constant 0 : i32
    %c0_i32_1 = arith.constant 0 : i32
    return %c0_i32, %c0_i32_0 : i32, i32
  }
  func.func @transform_4(%arg0: i32) -> (i32, i32) {
    %c0_i32 = arith.constant 0 : i32
    %c0_i32_0 = arith.constant 0 : i32
    %c0_i32_1 = arith.constant 0 : i32
    return %c0_i32, %c0_i32_0 : i32, i32
  }
  func.func @transform_5(%arg0: i32) -> (i32, i32) {
    %c0_i32 = arith.constant 0 : i32
    %c0_i32_0 = arith.constant 0 : i32
    %c0_i32_1 = arith.constant 0 : i32
    return %c0_i32, %c0_i32_0 : i32, i32
  }
  func.func @transform_6(%arg0: i32) -> (i32, i32) {
    %c0_i32 = arith.constant 0 : i32
    %c0_i32_0 = arith.constant 0 : i32
    return %c0_i32, %arg0 : i32, i32
  }
}

</mosaic_0001>

<bundles_post_ra>
// kernel: tpu_custom_call.1
= control target key start
LH: loop header
LB: loop body
LE: loop exit
PB: predicated region body
PF: predicated region fallthrough
CT: control target
= control target key end

     0   :  { %vm41_vm0 = vcmask 64512   ;;  %s699_s0 = inlined_call_operand.vmem [shape: f32[8,128], index: 0, kind: input, shape index: {}]   ;;  %s700_s1 = inlined_call_operand.vmem [shape: f32[128,8], index: 1, kind: input, shape index: {}]   ;;  %s701_s2 = inlined_call_operand.vmem [shape: f32[128,128], index: 2, kind: input, shape index: {}]   ;;  %s702_s3 = inlined_call_operand.vmem [shape: f32[128,1], index: 3, kind: input, shape index: {}]   ;;  %s703_s4 = inlined_call_operand.vmem [shape: f32[2,128], index: 4, kind: input, shape index: {}]   ;;  %s704_s5 = inlined_call_operand.vmem [shape: f32[2,1], index: 5, kind: input, shape index: {}]   ;;  %s705_s6 = inlined_call_operand.hbm [shape: f32[2,128], index: 6, kind: output, shape index: {}]  }
   0x1   :  { %v24_v0 = vld [vmem:[%s699_s0] sm:$0xff]  ;;  %v36_v2 = vld [vmem:[%s700_s1 + $0x58] sm:$0xff] }
   0x2   :  { %v25_v1 = vld [vmem:[%s700_s1] sm:$0xff]  ;;  %105 = vmatpush.msra.mxu0 %v24_v0  ;;  %424 = vmatpush.msra.mxu2 %v24_v0 }
   0x3   :  { %408 = vmatmul.msk.f32.vlgmr.msra.gmra.mxu0 %vm41_vm0, %v25_v1  ;;  %419 = vmatmul.msk.f32.vlgmr.msra.gmra.mxu2 %vm41_vm0, %v36_v2 }
   0x4   :  { %11 = vsyncpa [#allocation3], 0  ;;  %v26_v3 = vld [vmem:[%s700_s1 + $0x8] sm:$0xff]  ;;  %v37_v4 = vld [vmem:[%s700_s1 + $0x60] sm:$0xff]  ;;  %v472_v36 = vmov 0   ;;  %s473_s17 = smov [#allocation2]  }
   0x5   :  { %v27_v5 = vld [vmem:[%s700_s1 + $0x10] sm:$0xff]  ;;  %v38_v6 = vld [vmem:[%s700_s1 + $0x68] sm:$0xff]  ;;  %v28_v7 = vld [vmem:[%s700_s1 + $0x18] sm:$0xff]  ;;  %443 = vset.pattern.permute.xlu0 %v472_v36  ;;  %444 = vset.pattern.permute.xlu1 %v472_v36  ;;  %s397_s18 = sshll.u32 %s473_s17, 4  ;;  %s399_s21 = sshll.u32 %s705_s6, 4  ;;  %s398_s18 = int_to_ptr.vmem [resolvable:$true] %s397_s18  ;;  %s400_s21 = int_to_ptr.hbm [resolvable:$true] %s399_s21 }
   0x6   :  { %v39_v8 = vld [vmem:[%s700_s1 + $0x70] sm:$0xff]  ;;  %v29_v9 = vld [vmem:[%s700_s1 + $0x20] sm:$0xff]  ;;  %v40_v10 = vld [vmem:[%s700_s1 + $0x78] sm:$0xff]  ;;  %445 = vset.pattern.permute.xlu2 %v472_v36 }
   0x7   :  { %v30_v11 = vld [vmem:[%s700_s1 + $0x28] sm:$0xff]  ;;  %v31_v12 = vld [vmem:[%s700_s1 + $0x30] sm:$0xff]  ;;  %v32_v13 = vld [vmem:[%s700_s1 + $0x38] sm:$0xff] }
   0x8   :  { %v33_v14 = vld [vmem:[%s700_s1 + $0x40] sm:$0xff]  ;;  %v34_v15 = vld [vmem:[%s700_s1 + $0x48] sm:$0xff]  ;;  %v35_v16 = vld [vmem:[%s700_s1 + $0x50] sm:$0xff] }
   0x9   :  { %v202_v37 = vld [vmem:[%s702_s3 + $0x78] sm:$0xff]  ;;  %v200_v39 = vld [vmem:[%s702_s3 + $0x68] sm:$0xff]  ;;  %v201_v40 = vld [vmem:[%s702_s3 + $0x70] sm:$0xff] }
   0xa   :  { %280 = vperm.xlu0 %443, %v202_v37   ;;  %270 = vperm.xlu1 %444, %v200_v39   ;;  %v199_v42 = vld [vmem:[%s702_s3 + $0x60] sm:$0xff]  ;;  %v196_v43 = vld [vmem:[%s702_s3 + $0x48] sm:$0xff]  ;;  %v193_v49 = vld [vmem:[%s702_s3 + $0x30] sm:$0xff] }
   0xb   :  { %409 = vmatmul.msk.f32.gmra.mxu0 %vm41_vm0, %v26_v3  ;;  %420 = vmatmul.msk.f32.gmra.mxu2 %vm41_vm0, %v37_v4  ;;  %v195_v48 = vld [vmem:[%s702_s3 + $0x40] sm:$0xff]  ;;  %v190_v54 = vld [vmem:[%s702_s3 + $0x18] sm:$0xff]  ;;  %v180_v62 = vld [vmem:[%s701_s2 + $0x48] sm:$0xff] }
   0xc   :  { %v179_v58 = vld [vmem:[%s701_s2 + $0x40] sm:$0xff]  ;;  %v198_v60 = vld [vmem:[%s702_s3 + $0x58] sm:$0xff]  ;;  %v172_v63 = vld [vmem:[%s701_s2 + $0x8] sm:$0xff] }
   0xd   :  { %v171_v59 = vld [vmem:[%s701_s2] sm:$0xff]  ;;  %260 = vperm.xlu2 %445, %v198_v60   ;;  %v197_v0 = vld [vmem:[%s702_s3 + $0x50] sm:$0xff]  ;;  %v192_v1 = vld [vmem:[%s702_s3 + $0x28] sm:$0xff] }
   0xe   :  { %v187_v61 = vld [vmem:[%s702_s3] sm:$0xff]  ;;  %v181_v2 = vld [vmem:[%s701_s2 + $0x50] sm:$0xff]  ;;  %v194_v4 = vld [vmem:[%s702_s3 + $0x38] sm:$0xff] }
   0xf   :  { %v173_v3 = vld [vmem:[%s701_s2 + $0x10] sm:$0xff] }
  0x12   :  { %275 = vperm.xlu0 %443, %v201_v40   ;;  %265 = vperm.xlu1 %444, %v199_v42  }
  0x13   :  { %410 = vmatmul.msk.f32.gmra.mxu0 %vm41_vm0, %v27_v5  ;;  %421 = vmatmul.msk.f32.gmra.mxu2 %vm41_vm0, %v38_v6  ;;  %v189_v5 = vld [vmem:[%s702_s3 + $0x10] sm:$0xff]  ;;  %v182_v6 = vld [vmem:[%s701_s2 + $0x58] sm:$0xff] }
  0x15   :  { %255 = vperm.xlu2 %445, %v197_v0  }
  0x1a   :  { %250 = vperm.xlu0 %443, %v196_v43   ;;  %245 = vperm.xlu1 %444, %v195_v48  }
  0x1b   :  { %411 = vmatmul.msk.f32.gmra.mxu0 %vm41_vm0, %v28_v7  ;;  %422 = vmatmul.msk.f32.gmra.mxu2 %vm41_vm0, %v39_v8  ;;  %v174_v7 = vld [vmem:[%s701_s2 + $0x18] sm:$0xff]  ;;  %v191_v8 = vld [vmem:[%s702_s3 + $0x20] sm:$0xff] }
  0x1d   :  { %240 = vperm.xlu2 %445, %v194_v4  }
  0x22   :  { %235 = vperm.xlu0 %443, %v193_v49   ;;  %230 = vperm.xlu1 %444, %v192_v1  }
  0x23   :  { %412 = vmatmul.msk.f32.gmra.mxu0 %vm41_vm0, %v29_v9  ;;  %423 = vmatmul.msk.f32.gmra.mxu2 %vm41_vm0, %v40_v10  ;;  %v365_v9 = vld [vmem:[%s704_s5] sm:$0x3] }
  0x24   :  { %v183_v10 = vld [vmem:[%s701_s2 + $0x60] sm:$0xff] }
  0x25   :  { %225 = vperm.xlu2 %445, %v191_v8  }
  0x2a   :  { %220 = vperm.xlu0 %443, %v190_v54   ;;  %215 = vperm.xlu1 %444, %v189_v5  }
  0x2b   :  { %413 = vmatmul.msk.f32.gmra.mxu0 %vm41_vm0, %v30_v11  ;;  %v175_v11 = vld [vmem:[%s701_s2 + $0x20] sm:$0xff] }
  0x32   :  { %205 = vperm.xlu0 %443, %v187_v61   ;;  %368 = vperm.xlu1 %444, %v365_v9  }
  0x33   :  { %414 = vmatmul.msk.f32.gmra.mxu0 %vm41_vm0, %v31_v12  ;;  %v188_v12 = vld [vmem:[%s702_s3 + $0x8] sm:$0xff] }
  0x34   :  { %210 = vperm.xlu2 %445, %v188_v12  }
  0x3b   :  { %415 = vmatmul.msk.f32.gmra.mxu0 %vm41_vm0, %v32_v13  ;;  %v184_v13 = vld [vmem:[%s701_s2 + $0x68] sm:$0xff] }
  0x43   :  { %416 = vmatmul.msk.f32.gmra.mxu0 %vm41_vm0, %v33_v14  ;;  %v176_v14 = vld [vmem:[%s701_s2 + $0x28] sm:$0xff] }
  0x4b   :  { %417 = vmatmul.msk.f32.gmra.mxu0 %vm41_vm0, %v34_v15  ;;  %v185_v15 = vld [vmem:[%s701_s2 + $0x70] sm:$0xff] }
  0x53   :  { %418 = vmatmul.msk.f32.gmra.mxu0 %vm41_vm0, %v35_v16  ;;  %v177_v16 = vld [vmem:[%s701_s2 + $0x30] sm:$0xff] }
  0x80   :  { %v576_v17 = vpop.f32.mrf.mxu0 }
  0x81   :  { %v155_v57 = vmax.f32 %v576_v17, 0.0  ;;  %v186_v17 = vld [vmem:[%s701_s2 + $0x78] sm:$0xff] }
  0x86   :  { %v140_v18 = vpop.f32.mrf.mxu2 }
  0x87   :  { %v166_v32 = vmax.f32 %v140_v18, 0.0  ;;  %v178_v18 = vld [vmem:[%s701_s2 + $0x38] sm:$0xff] }
  0x88   :  { %v578_v19 = vpop.f32.mrf.mxu0 }
  0x89   :  { %v156_v56 = vmax.f32 %v578_v19, 0.0 }
  0x8e   :  { %v143_v20 = vpop.f32.mrf.mxu2 }
  0x8f   :  { %v167_v31 = vmax.f32 %v143_v20, 0.0 }
  0x90   :  { %v580_v21 = vpop.f32.mrf.mxu0 }
  0x91   :  { %v157_v55 = vmax.f32 %v580_v21, 0.0 }
  0x96   :  { %v146_v22 = vpop.f32.mrf.mxu2 }
  0x97   :  { %v168_v30 = vmax.f32 %v146_v22, 0.0 }
  0x98   :  { %v582_v23 = vpop.f32.mrf.mxu0 }
  0x99   :  { %v158_v53 = vmax.f32 %v582_v23, 0.0 }
  0x9e   :  { %v149_v24 = vpop.f32.mrf.mxu2 }
  0x9f   :  { %v169_v27 = vmax.f32 %v149_v24, 0.0 }
  0xa0   :  { %v119_v25 = vpop.f32.mrf.mxu0 }
  0xa1   :  { %v159_v52 = vmax.f32 %v119_v25, 0.0 }
  0xa6   :  { %v152_v26 = vpop.f32.mrf.mxu2 }
  0xa7   :  { %v170_v28 = vmax.f32 %v152_v26, 0.0 }
  0xa8   :  { %v122_v29 = vpop.f32.mrf.mxu0 }
  0xa9   :  { %283 = vmatpush.msra.mxu1 %v170_v28  ;;  %425 = vmatpush.msra.mxu3 %v170_v28  ;;  %v160_v51 = vmax.f32 %v122_v29, 0.0 }
  0xab   :  { %284 = vmatpush.msra.mxu1 %v169_v27  ;;  %426 = vmatpush.msra.mxu3 %v169_v27  ;;  %v281_v27 = vpop.permute.xlu0 %280 }
  0xad   :  { %285 = vmatpush.msra.mxu1 %v168_v30  ;;  %427 = vmatpush.msra.mxu3 %v168_v30  ;;  %v271_v30 = vpop.permute.xlu1 %270 }
  0xaf   :  { %286 = vmatpush.msra.mxu1 %v167_v31  ;;  %428 = vmatpush.msra.mxu3 %v167_v31  ;;  %v261_v31 = vpop.permute.xlu2 %260 }
  0xb0   :  { %v125_v33 = vpop.f32.mrf.mxu0 }
  0xb1   :  { %287 = vmatpush.msra.mxu1 %v166_v32  ;;  %429 = vmatpush.msra.mxu3 %v166_v32  ;;  %v161_v50 = vmax.f32 %v125_v33, 0.0 }
  0xb3   :  { %v276_v33 = vpop.permute.xlu0 %275 }
  0xb5   :  { %v266_v36 = vpop.permute.xlu1 %265 }
  0xb7   :  { %v256_v37 = vpop.permute.xlu2 %255 }
  0xb8   :  { %v128_v34 = vpop.f32.mrf.mxu0 }
  0xb9   :  { %v162_v47 = vmax.f32 %v128_v34, 0.0 }
  0xc0   :  { %v131_v35 = vpop.f32.mrf.mxu0 }
  0xc1   :  { %v163_v46 = vmax.f32 %v131_v35, 0.0 }
  0xc8   :  { %v134_v38 = vpop.f32.mrf.mxu0 }
  0xc9   :  { %v164_v45 = vmax.f32 %v134_v38, 0.0  ;;  %v251_v38 = vpop.permute.xlu0 %250 }
  0xd0   :  { %v137_v41 = vpop.f32.mrf.mxu0 }
  0xd1   :  { %v165_v44 = vmax.f32 %v137_v41, 0.0  ;;  %v236_v49 = vpop.permute.xlu0 %235 }
  0xd3   :  { %288 = vmatpush.msra.mxu1 %v165_v44  ;;  %430 = vmatpush.msra.mxu3 %v165_v44 }
  0xd5   :  { %289 = vmatpush.msra.mxu1 %v164_v45  ;;  %431 = vmatpush.msra.mxu3 %v164_v45  ;;  %v246_v45 = vpop.permute.xlu1 %245 }
  0xd7   :  { %290 = vmatpush.msra.mxu1 %v163_v46  ;;  %432 = vmatpush.msra.mxu3 %v163_v46  ;;  %v241_v46 = vpop.permute.xlu2 %240 }
  0xd9   :  { %291 = vmatpush.msra.mxu1 %v162_v47  ;;  %433 = vmatpush.msra.mxu3 %v162_v47 }
  0xdb   :  { %292 = vmatpush.msra.mxu1 %v161_v50  ;;  %434 = vmatpush.msra.mxu3 %v161_v50 }
  0xdd   :  { %293 = vmatpush.msra.mxu1 %v160_v51  ;;  %435 = vmatpush.msra.mxu3 %v160_v51 }
  0xdf   :  { %294 = vmatpush.msra.mxu1 %v159_v52  ;;  %436 = vmatpush.msra.mxu3 %v159_v52  ;;  %v226_v60 = vpop.permute.xlu2 %225 }
  0xe1   :  { %295 = vmatpush.msra.mxu1 %v158_v53  ;;  %437 = vmatpush.msra.mxu3 %v158_v53 }
  0xe3   :  { %296 = vmatpush.msra.mxu1 %v157_v55  ;;  %438 = vmatpush.msra.mxu3 %v157_v55 }
  0xe5   :  { %297 = vmatpush.msra.mxu1 %v156_v56  ;;  %439 = vmatpush.msra.mxu3 %v156_v56  ;;  %v231_v56 = vpop.permute.xlu1 %230 }
  0xe7   :  { %298 = vmatpush.msra.mxu1 %v155_v57  ;;  %440 = vmatpush.msra.mxu3 %v155_v57  ;;  %v211_v9 = vpop.permute.xlu2 %210 }
  0xe8   :  { %323 = vmatmul.f32.vlgmr.msra.gmra.mxu3 %v179_v58  ;;  %299 = vmatmul.f32.vlgmr.msra.gmra.mxu1 %v171_v59 }
  0xf0   :  { %326 = vmatmul.f32.gmra.mxu3 %v180_v62  ;;  %302 = vmatmul.f32.gmra.mxu1 %v172_v63  ;;  %v221_v63 = vpop.permute.xlu0 %220 }
  0xf8   :  { %329 = vmatmul.f32.gmra.mxu3 %v181_v2  ;;  %305 = vmatmul.f32.gmra.mxu1 %v173_v3  ;;  %v206_v12 = vpop.permute.xlu0 %205 }
 0x100   :  { %332 = vmatmul.f32.gmra.mxu3 %v182_v6  ;;  %308 = vmatmul.f32.gmra.mxu1 %v174_v7  ;;  %v216_v6 = vpop.permute.xlu1 %215 }
 0x108   :  { %335 = vmatmul.f32.gmra.mxu3 %v183_v10  ;;  %311 = vmatmul.f32.gmra.mxu1 %v175_v11 }
 0x110   :  { %338 = vmatmul.f32.gmra.mxu3 %v184_v13  ;;  %314 = vmatmul.f32.gmra.mxu1 %v176_v14 }
 0x118   :  { %341 = vmatmul.f32.gmra.mxu3 %v185_v15  ;;  %317 = vmatmul.f32.gmra.mxu1 %v177_v16 }
 0x120   :  { %344 = vmatmul.f32.gmra.mxu3 %v186_v17  ;;  %320 = vmatmul.f32.gmra.mxu1 %v178_v18 }
 0x165   :  { %v687_v19 = vpop.f32.mrf.mxu1 }
 0x166   :  { %v301_v15 = vadd.f32 %v687_v19, %v206_v12 }
 0x168   :  { %v348_v18 = vmax.f32 %v301_v15, 0.0 }
 0x16b   :  { %v324_v20 = vpop.f32.mrf.mxu3 }
 0x16c   :  { %v325_v58 = vadd.f32 %v324_v20, %v246_v45  ;;  %v364_v20 = vld [vmem:[%s703_s4] sm:$0x3] }
 0x16d   :  { %v689_v22 = vpop.f32.mrf.mxu1 }
 0x16e   :  { %v356_v0 = vmax.f32 %v325_v58, 0.0  ;;  %v304_v14 = vadd.f32 %v689_v22, %v211_v9 }
 0x170   :  { %v349_v17 = vmax.f32 %v304_v14, 0.0 }
 0x173   :  { %v327_v21 = vpop.f32.mrf.mxu3 }
 0x174   :  { %v328_v54 = vadd.f32 %v327_v21, %v251_v38  ;;  %v369_v21 = vpop.permute.xlu1 %368 }
 0x175   :  { %v306_v24 = vpop.f32.mrf.mxu1 }
 0x176   :  { %v357_v61 = vmax.f32 %v328_v54, 0.0  ;;  %v307_v11 = vadd.f32 %v306_v24, %v216_v6 }
 0x178   :  { %v350_v16 = vmax.f32 %v307_v11, 0.0 }
 0x17b   :  { %v330_v23 = vpop.f32.mrf.mxu3 }
 0x17c   :  { %v331_v52 = vadd.f32 %v330_v23, %v256_v37 }
 0x17d   :  { %v309_v26 = vpop.f32.mrf.mxu1 }
 0x17e   :  { %v358_v59 = vmax.f32 %v331_v52, 0.0  ;;  %v310_v7 = vadd.f32 %v309_v26, %v221_v63 }
 0x180   :  { %v351_v13 = vmax.f32 %v310_v7, 0.0 }
 0x183   :  { %v333_v25 = vpop.f32.mrf.mxu3 }
 0x184   :  { %v334_v50 = vadd.f32 %v333_v25, %v261_v31 }
 0x185   :  { %v312_v29 = vpop.f32.mrf.mxu1 }
 0x186   :  { %v359_v55 = vmax.f32 %v334_v50, 0.0  ;;  %v313_v4 = vadd.f32 %v312_v29, %v226_v60 }
 0x188   :  { %v352_v10 = vmax.f32 %v313_v4, 0.0 }
 0x18b   :  { %v336_v28 = vpop.f32.mrf.mxu3 }
 0x18c   :  { %v337_v47 = vadd.f32 %v336_v28, %v266_v36 }
 0x18d   :  { %v315_v34 = vpop.f32.mrf.mxu1 }
 0x18e   :  { %v360_v53 = vmax.f32 %v337_v47, 0.0  ;;  %v316_v2 = vadd.f32 %v315_v34, %v231_v56 }
 0x190   :  { %v353_v8 = vmax.f32 %v316_v2, 0.0 }
 0x193   :  { %v339_v32 = vpop.f32.mrf.mxu3 }
 0x194   :  { %v340_v43 = vadd.f32 %v339_v32, %v271_v30 }
 0x195   :  { %v318_v42 = vpop.f32.mrf.mxu1 }
 0x196   :  { %v361_v51 = vmax.f32 %v340_v43, 0.0  ;;  %v319_v1 = vadd.f32 %v318_v42, %v236_v49 }
 0x198   :  { %v354_v5 = vmax.f32 %v319_v1, 0.0 }
 0x19b   :  { %v342_v35 = vpop.f32.mrf.mxu3 }
 0x19c   :  { %v343_v40 = vadd.f32 %v342_v35, %v276_v33 }
 0x19d   :  { %v321_v57 = vpop.f32.mrf.mxu1 }
 0x19e   :  { %v362_v48 = vmax.f32 %v343_v40, 0.0  ;;  %v322_v62 = vadd.f32 %v321_v57, %v241_v46 }
 0x1a0   :  { %v355_v3 = vmax.f32 %v322_v62, 0.0 }
 0x1a3   :  { %v345_v39 = vpop.f32.mrf.mxu3 }
 0x1a4   :  { %v346_v41 = vadd.f32 %v345_v39, %v281_v27 }
 0x1a6   :  { %v363_v44 = vmax.f32 %v346_v41, 0.0 }
 0x1a8   :  { %371 = vmatpush.msrb.mxu2 %v363_v44 }
 0x1aa   :  { %372 = vmatpush.msrb.mxu2 %v362_v48 }
 0x1ac   :  { %373 = vmatpush.msrb.mxu2 %v361_v51 }
 0x1ae   :  { %374 = vmatpush.msrb.mxu2 %v360_v53 }
 0x1b0   :  { %375 = vmatpush.msrb.mxu2 %v359_v55 }
 0x1b2   :  { %376 = vmatpush.msrb.mxu2 %v358_v59 }
 0x1b4   :  { %377 = vmatpush.msrb.mxu2 %v357_v61 }
 0x1b6   :  { %378 = vmatpush.msrb.mxu2 %v356_v0 }
 0x1b8   :  { %379 = vmatpush.msrb.mxu2 %v355_v3 }
 0x1ba   :  { %380 = vmatpush.msrb.mxu2 %v354_v5 }
 0x1bc   :  { %381 = vmatpush.msrb.mxu2 %v353_v8 }
 0x1be   :  { %382 = vmatpush.msrb.mxu2 %v352_v10 }
 0x1c0   :  { %383 = vmatpush.msrb.mxu2 %v351_v13 }
 0x1c2   :  { %384 = vmatpush.msrb.mxu2 %v350_v16 }
 0x1c4   :  { %385 = vmatpush.msrb.mxu2 %v349_v17 }
 0x1c6   :  { %386 = vmatpush.msrb.mxu2 %v348_v18 }
 0x1c7   :  { %387 = vmatmul.f32.vlgmr.msrb.gmra.mxu2 %v364_v20 }
 0x24a   :  { %v388_v19 = vpop.f32.mrf.mxu2 }
 0x24b   :  { %v389_v22 = vadd.f32 %v388_v19, %v369_v21 }
 0x24d   :  { %391 = vst [vmem:[#allocation2] sm:$0x3] %v389_v22 }
 0x24e   :  { %402 = dma.vmem_to_hbm [thread:$0]  %s398_s18, 32, %s400_s21, [#allocation3]  }
 0x24f   :  { %470 = dma.done.wait [#allocation3], 32  }
 0x250   :  { %471 = vsyncadd [#allocation3], 4294967264 }
 0x251   :  { %407 = vsyncpa [#allocation3], 1 }

</bundles_post_ra>
